<compile_context>
chip_gen: v6e
topology: v6e:2x2x1
jax: 0.10.0
libtpu: 0.0.40
codegen_flags: <defaults>
</compile_context>

<pallas_src>
import functools

import jax
import jax.numpy as jnp
from jax import lax
from jax.experimental import pallas as pl
from jax.experimental.pallas import tpu as pltpu


def _round_up(v, m):
    return (v + m - 1) // m * m


def _logsumexp_rows(logits):
    """Numerically stable logsumexp over the last (class/lane) axis."""
    m = jnp.max(logits, axis=-1, keepdims=True)
    s = jnp.sum(jnp.exp(logits - m), axis=-1, keepdims=True)
    return m + jnp.log(s)


# --------------------------- resident-W kernels ------------------------------

def _energy_kernel_resident(x_ref, w_ref, b_ref, logits_ref, k_ref):
    """One batch tile: logits = x @ W + b ; k = logsumexp(logits, -1)."""
    logits = jnp.dot(x_ref[...], w_ref[...],
                     preferred_element_type=jnp.float32) + b_ref[...]
    logits_ref[...] = logits.astype(logits_ref.dtype)
    k_ref[...] = _logsumexp_rows(logits)


def _energy_kernel_resident_gather(y_ref, x_ref, w_ref, b_ref,
                                   logits_ref, g_ref):
    """One batch tile: logits = x @ W + b ; g[r, 0] = logits[r, y[r]]."""
    logits = jnp.dot(x_ref[...], w_ref[...],
                     preferred_element_type=jnp.float32) + b_ref[...]
    logits_ref[...] = logits.astype(logits_ref.dtype)
    col = lax.broadcasted_iota(jnp.int32, logits.shape, 1)        # (TB, C)
    onehot = col == y_ref[...]                                    # bcast (TB,1)
    g_ref[...] = jnp.sum(jnp.where(onehot, logits, 0.0),
                         axis=-1, keepdims=True)


# ---------------- K-streaming fallback (W too large for VMEM) ----------------

def _energy_kernel_stream(x_ref, w_ref, b_ref, logits_ref, k_ref,
                          *, d_total, tk):
    ki = pl.program_id(1)
    nk = pl.num_programs(1)

    @pl.when(ki == 0)
    def _init():
        # Accumulate directly into the resident logits output block
        # (its block index does not change along the K axis).
        logits_ref[...] = jnp.broadcast_to(
            b_ref[...], logits_ref.shape).astype(logits_ref.dtype)

    x = x_ref[...]
    w = w_ref[...]
    if d_total % tk != 0:
        # Mask the D tail of the last strip: out-of-bounds tile data is
        # undefined and must not reach the MXU (0 * Inf = NaN).
        base = ki * tk
        kx = base + lax.broadcasted_iota(jnp.int32, x.shape, 1)
        kw = base + lax.broadcasted_iota(jnp.int32, w.shape, 0)
        x = jnp.where(kx < d_total, x, 0).astype(x.dtype)
        w = jnp.where(kw < d_total, w, 0).astype(w.dtype)

    logits_ref[...] += jnp.dot(x, w, preferred_element_type=jnp.float32)

    @pl.when(ki == nk - 1)
    def _finalize():
        k_ref[...] = _logsumexp_rows(logits_ref[...])


# --------------------------------- wrapper -----------------------------------

def energy_model_forward(x, w, b, y=None, *, compute_dtype=jnp.bfloat16,
                         vmem_limit_bytes=48 * 1024 * 1024):
    """Reproduces EnergyModel.forward for a linear classifier f.

    Returns (k, logits) when y is None, else (gathered_logits, logits).
    Operands are cast to `compute_dtype` (bf16 by default) for the MXU; the
    contraction accumulates in float32, so logits differ from a pure f32
    matmul only at bf16 input-rounding level.
    """
    B, D = x.shape
    C = w.shape[1]

    # bf16 MXU operands, f32 accumulation inside the kernel.
    xc = x.astype(compute_dtype)
    wc = w.astype(compute_dtype)
    b2 = b.reshape(1, C).astype(jnp.float32)
    op_bytes = jnp.dtype(compute_dtype).itemsize
    w_bytes = D * C * op_bytes

    # ---- batch tile selection ------------------------------------------------
    def _vmem_est(tb, resident_w):
        # Conservative: assume everything is double-buffered.
        x_tile = tb * D * op_bytes
        out_tile = tb * C * 4 + tb * 4
        return 2 * (x_tile + out_tile + (w_bytes if resident_w else 0)) + (1 << 20)

    budget = int(0.75 * vmem_limit_bytes)
    resident = _vmem_est(8, True) <= budget            # keep W fully in VMEM?

    TB = min(512, _round_up(B, 8))
    while TB > 8 and _vmem_est(TB, resident) > budget:
        TB = max(8, _round_up(TB // 2, 8))
    # v7x has 2 TensorCores: give the "parallel" batch axis >= 2 tiles if B allows.
    while TB > 8 and pl.cdiv(B, TB) < 2:
        TB = max(8, _round_up(TB // 2, 8))
    nb = pl.cdiv(B, TB)

    cost = pl.CostEstimate(
        flops=2 * B * D * C,
        transcendentals=B * (C + 1),                   # exp + log per row
        bytes_accessed=(B * D + D * C) * op_bytes + 4 * (B * C + B),
    )
    out_logits = jax.ShapeDtypeStruct((B, C), jnp.float32)
    out_col = jax.ShapeDtypeStruct((B, 1), jnp.float32)

    if resident:
        in_specs_common = [
            pl.BlockSpec((TB, D), lambda i: (i, 0)),   # x batch tile (full D)
            pl.BlockSpec((D, C), lambda i: (0, 0)),    # W: fetched once, resident
            pl.BlockSpec((1, C), lambda i: (0, 0)),    # bias: resident
        ]
        out_specs = (
            pl.BlockSpec((TB, C), lambda i: (i, 0)),   # logits
            pl.BlockSpec((TB, 1), lambda i: (i, 0)),   # k or gathered
        )
        params = pltpu.CompilerParams(
            dimension_semantics=("parallel",),
            vmem_limit_bytes=vmem_limit_bytes)

        if y is None:
            logits, k = pl.pallas_call(
                _energy_kernel_resident,
                out_shape=(out_logits, out_col),
                grid_spec=pltpu.PrefetchScalarGridSpec(
                    num_scalar_prefetch=0, grid=(nb,),
                    in_specs=in_specs_common, out_specs=out_specs),
                compiler_params=params,
                cost_estimate=cost,
            )(xc, wc, b2)
            return k[:, 0], logits

        y2 = y.reshape(B, 1).astype(jnp.int32)
        logits, g = pl.pallas_call(
            _energy_kernel_resident_gather,
            out_shape=(out_logits, out_col),
            grid_spec=pltpu.PrefetchScalarGridSpec(
                num_scalar_prefetch=0, grid=(nb,),
                in_specs=[pl.BlockSpec((TB, 1), lambda i: (i, 0))] + in_specs_common,
                out_specs=out_specs),
            compiler_params=params,
            cost_estimate=cost,
        )(y2, xc, wc, b2)
        return g, logits

    # ---- streaming fallback: W strips over a K grid axis ----------------------
    # TODO(synk): for very large class counts, add a C grid axis with an online
    # logsumexp so the full (TB, C) logits row need not stay resident (v7x 64 MiB).
    TK = 512
    while TK > 128 and TK > D:
        TK //= 2
    nk = pl.cdiv(D, TK)
    kernel = functools.partial(_energy_kernel_stream, d_total=D, tk=TK)
    logits, k = pl.pallas_call(
        kernel,
        out_shape=(out_logits, out_col),
        grid_spec=pltpu.PrefetchScalarGridSpec(
            num_scalar_prefetch=0, grid=(nb, nk),
            in_specs=[
                pl.BlockSpec((TB, TK), lambda i, kk: (i, kk)),
                pl.BlockSpec((TK, C), lambda i, kk: (kk, 0)),
                pl.BlockSpec((1, C), lambda i, kk: (0, 0)),
            ],
            out_specs=(
                pl.BlockSpec((TB, C), lambda i, kk: (i, 0)),
                pl.BlockSpec((TB, 1), lambda i, kk: (i, 0)),
            )),
        compiler_params=pltpu.CompilerParams(
            dimension_semantics=("parallel", "arbitrary"),
            vmem_limit_bytes=vmem_limit_bytes),
        cost_estimate=cost,
    )(xc, wc, b2)
    if y is None:
        return k[:, 0], logits
    return jnp.take_along_axis(logits, y[:, None], axis=1), logits


if __name__ == "__main__":
    key = jax.random.PRNGKey(0)
    B, D, C = 8, 32, 16

    kx, kw, kb, ky = jax.random.split(key, 4)
    x = jax.random.normal(kx, (B, D), dtype=jnp.float32)
    # Deterministic synthetic parameters for the wrapped classifier f.
    w = jax.random.normal(kw, (D, C), dtype=jnp.float32) * 0.1
    b = jax.random.normal(kb, (C,), dtype=jnp.float32) * 0.01
    y = jax.random.randint(ky, (B,), 0, C)

    # Branch 1: y is None  -> (k, logits)
    k_out, logits_out = energy_model_forward(x, w, b, y=None)
    jax.block_until_ready((k_out, logits_out))

    # Branch 2: y provided -> (gathered logits, logits)
    g_out, logits_out2 = energy_model_forward(x, w, b, y=y)
    jax.block_until_ready((g_out, logits_out2))

    # Reference computed with the same bf16-operand / f32-accumulation matmul.
    logits_ref = (jnp.dot(x.astype(jnp.bfloat16), w.astype(jnp.bfloat16),
                          preferred_element_type=jnp.float32)
                  + b[None, :].astype(jnp.float32))
    k_ref = jax.scipy.special.logsumexp(logits_ref, axis=1)
    g_ref = jnp.take_along_axis(logits_ref, y[:, None], axis=1)

    assert logits_out.shape == (B, C) and k_out.shape == (B,)
    assert g_out.shape == (B, 1)
    assert jnp.allclose(logits_out, logits_ref, atol=1e-4, rtol=1e-4)
    assert jnp.allclose(k_out, k_ref, atol=1e-4, rtol=1e-4)
    assert jnp.allclose(logits_out2, logits_ref, atol=1e-4, rtol=1e-4)
    assert jnp.allclose(g_out, g_ref, atol=1e-4, rtol=1e-4)

    print("KERNEL_OK")
</pallas_src>

<mosaic_0001>
module attributes {stable_mosaic.version = 11 : i64} {
  func.func @_energy_kernel_resident(%arg0: i32, %arg1: memref<8x32xbf16, #tpu.memory_space<vmem>>, %arg2: memref<32x16xbf16, #tpu.memory_space<vmem>>, %arg3: memref<1x16xf32, #tpu.memory_space<vmem>>, %arg4: memref<8x16xf32, #tpu.memory_space<vmem>>, %arg5: memref<8x1xf32, #tpu.memory_space<vmem>>) attributes {dimension_semantics = [#tpu.dimension_semantics<parallel>], iteration_bounds = array<i64: 1>, scalar_prefetch = 0 : i64, scratch_operands = 0 : i64, tpu.core_type = #tpu.core_type<tc>, window_params = [{transform_indices = @transform_0, window_bounds = array<i64: 8, 32>}, {pipeline_mode = #tpu.pipeline_mode<synchronous>, transform_indices = @transform_1, window_bounds = array<i64: 32, 16>}, {pipeline_mode = #tpu.pipeline_mode<synchronous>, transform_indices = @transform_2, window_bounds = array<i64: 1, 16>}, {transform_indices = @transform_3, window_bounds = array<i64: 8, 16>}, {transform_indices = @transform_4, window_bounds = array<i64: 8, 1>}]} {
    %c0 = arith.constant 0 : index
    %c0_0 = arith.constant 0 : index
    %0 = vector.load %arg1[%c0, %c0_0] : memref<8x32xbf16, #tpu.memory_space<vmem>>, vector<8x32xbf16>
    %c0_1 = arith.constant 0 : index
    %c0_2 = arith.constant 0 : index
    %1 = vector.load %arg2[%c0_1, %c0_2] : memref<32x16xbf16, #tpu.memory_space<vmem>>, vector<32x16xbf16>
    %cst = arith.constant dense<0.000000e+00> : vector<8x16xf32>
    %2 = tpu.matmul %0, %1, %cst {dimension_numbers = #tpu.dot_dimension_numbers<[1], [0], [0], [1], [0, 0, 1, 1], [], []>} : vector<8x32xbf16>, vector<32x16xbf16>, vector<8x16xf32> -> vector<8x16xf32>
    %c0_3 = arith.constant 0 : index
    %c0_4 = arith.constant 0 : index
    %3 = vector.load %arg3[%c0_3, %c0_4] : memref<1x16xf32, #tpu.memory_space<vmem>>, vector<1x16xf32>
    %4 = vector.broadcast %3 : vector<1x16xf32> to vector<8x16xf32>
    %5 = arith.addf %2, %4 : vector<8x16xf32>
    %c0_5 = arith.constant 0 : index
    %c0_6 = arith.constant 0 : index
    %6 = vector.load %arg4[%c0_5, %c0_6] : memref<8x16xf32, #tpu.memory_space<vmem>>, vector<8x16xf32>
    tpu.vector_store %arg4[%c0_5, %c0_6], %5 {strides = array<i32>} : memref<8x16xf32, #tpu.memory_space<vmem>>, vector<8x16xf32>,
    %cst_7 = arith.constant dense<0xFF800000> : vector<8xf32>
    %7 = vector.multi_reduction <maximumf>, %5, %cst_7 [1] : vector<8x16xf32> to vector<8xf32>
    %8 = vector.shape_cast %7 : vector<8xf32> to vector<8x1xf32>
    %9 = vector.broadcast %8 : vector<8x1xf32> to vector<8x16xf32>
    %10 = arith.subf %5, %9 : vector<8x16xf32>
    %11 = math.exp %10 : vector<8x16xf32>
    %cst_8 = arith.constant dense<0.000000e+00> : vector<8xf32>
    %12 = vector.multi_reduction <add>, %11, %cst_8 [1] : vector<8x16xf32> to vector<8xf32>
    %13 = vector.shape_cast %12 : vector<8xf32> to vector<8x1xf32>
    %14 = math.log %13 : vector<8x1xf32>
    %15 = arith.addf %8, %14 : vector<8x1xf32>
    %c0_9 = arith.constant 0 : index
    %c0_10 = arith.constant 0 : index
    %16 = vector.load %arg5[%c0_9, %c0_10] : memref<8x1xf32, #tpu.memory_space<vmem>>, vector<8x1xf32>
    tpu.vector_store %arg5[%c0_9, %c0_10], %15 {strides = array<i32>} : memref<8x1xf32, #tpu.memory_space<vmem>>, vector<8x1xf32>,
    return
  }
  func.func @transform_0(%arg0: i32) -> (i32, i32) {
    %c0_i32 = arith.constant 0 : i32
    %c0_i32_0 = arith.constant 0 : i32
    return %arg0, %c0_i32 : i32, i32
  }
  func.func @transform_1(%arg0: i32) -> (i32, i32) {
    %c0_i32 = arith.constant 0 : i32
    %c0_i32_0 = arith.constant 0 : i32
    %c0_i32_1 = arith.constant 0 : i32
    return %c0_i32, %c0_i32_0 : i32, i32
  }
  func.func @transform_2(%arg0: i32) -> (i32, i32) {
    %c0_i32 = arith.constant 0 : i32
    %c0_i32_0 = arith.constant 0 : i32
    %c0_i32_1 = arith.constant 0 : i32
    return %c0_i32, %c0_i32_0 : i32, i32
  }
  func.func @transform_3(%arg0: i32) -> (i32, i32) {
    %c0_i32 = arith.constant 0 : i32
    %c0_i32_0 = arith.constant 0 : i32
    return %arg0, %c0_i32 : i32, i32
  }
  func.func @transform_4(%arg0: i32) -> (i32, i32) {
    %c0_i32 = arith.constant 0 : i32
    %c0_i32_0 = arith.constant 0 : i32
    return %arg0, %c0_i32 : i32, i32
  }
}

</mosaic_0001>

<bundles_post_ra>
// kernel: tpu_custom_call.1
= control target key start
LH: loop header
LB: loop body
LE: loop exit
PB: predicated region body
PF: predicated region fallthrough
CT: control target
= control target key end

     0   :  { %v166_v1 = vmov 0.0   ;;  %vm167_vm0 = vmmov 0   ;;  %s212_s0 = inlined_call_operand.vmem [shape: bf16[8,32], index: 0, kind: input, shape index: {}]   ;;  %s213_s1 = inlined_call_operand.vmem [shape: bf16[32,16], index: 1, kind: input, shape index: {}]   ;;  %s214_s2 = inlined_call_operand.vmem [shape: f32[1,16], index: 2, kind: input, shape index: {}]   ;;  %s215_s3 = inlined_call_operand.hbm [shape: f32[8,16], index: 3, kind: output, shape index: {0}]   ;;  %s216_s4 = inlined_call_operand.vmem [shape: f32[8,1], index: 4, kind: output, shape index: {1}]  }
   0x1   :  { %v138_v0 = vld [vmem:[%s213_s1 + $0x8] sm:$0xff]   ;;  %127 = vmatprep.subr.bf16.mxu0 %v166_v1  ;;  %v139_v2 = vld [vmem:[%s213_s1] sm:$0xff]   ;;  %131 = vmatprep.mubr.msk.bf16.mxu0 %vm167_vm0, %v166_v1 }
   0x2   :  { %128 = vmatpush3.bf16.msra.mxu0 %v138_v0 }
   0x3   :  { %129 = vmatprep.subr.bf16.mxu0 %v166_v1 }
   0x4   :  { %10 = vsyncpa [#allocation3], 0  ;;  %v18_v3 = vld [vmem:[%s212_s0] sm:$0xf]  ;;  %vm42_vm1 = vcmask 261120   ;;  %vm86_vm2 = vcmask 130048  }
   0x5   :  { %v120_v4 = vld [vmem:[%s214_s2] ss:$0 sm:$0xff]  ;;  %s168_s0 = smov [#allocation2]  }
   0x6   :  { %130 = vmatpush3.bf16.msra.mxu0 %v139_v2  ;;  %s108_s1 = sshll.u32 %s168_s0, 4  ;;  %s109_s1 = int_to_ptr.vmem [resolvable:$true] %s108_s1 }
   0x7   :  { %s144_s2 = scalar_lea.vmem %s109_s1, 128  ;;  %p149_p1 = scmp.lt.s32.totalorder %s109_s1, %s109_s1 }
   0x8   :  { %p145_p0 = scmp.ne.s32.totalorder %s109_s1, %s144_s2  ;;  %p150_p2 = scmp.lt.s32.totalorder %s144_s2, %s144_s2 }
   0x9   :  { %132 = vmatmul.mubr.msk.bf16.vlgmr.msra.gmra.mxu0 %vm42_vm1, %v18_v3 }
   0xa   :  { %p151_p3 = por %p150_p2, %p149_p1 }
   0xc   :  { %p152_p4 = pnand %p151_p3, %p145_p0 }
  0xc9   :  { %v80_v5 = vpop.f32.mrf.mxu0 }
  0xca   :  { %v81_v6 = vadd.f32 %v120_v4, %v80_v5 }
  0xcb   :  { %v133_v7 = vpop.f32.mrf.mxu0 }
  0xcc   :  { %v88_v8 = vsel %vm86_vm2, %v81_v6, -inf  ;;  %87 = vst.msk [vmem:[#allocation2] sm:$0xff] %vm86_vm2, %v81_v6 }
  0xcd   :  { %89 = vmax.xlane.f32.xlu0 %v88_v8  ;;  %v83_v9 = vpop.f32.mrf.mxu0 }
  0xcf   :  { %v134_v10 = vpop.f32.mrf.mxu0 }
 0x156   :  { %v90_v11 = vpop.xlane.xlu0 %89 }
 0x157   :  { %v91_v12 = vsub.f32 %v81_v6, %v90_v11 }
 0x159   :  { %v92_v13 = vmul.f32 1.442695, %v91_v12 }
 0x15b   :  { %140 = vpow2.f32 %v92_v13 }
 0x168   :  { %v141_v14 = vpop.eup %140 }
 0x169   :  { %v94_v15 = vsel %vm86_vm2, %v141_v14, 0.0 }
 0x16a   :  { %95 = vadd.xlane.f32.xlu0 %v94_v15 }
 0x16b   :  { %155 = shalt.err (!%p152_p4)
}
 0x16c   :  { %111 = dma.vmem_to_hbm [thread:$0]  %s109_s1, 128, %s215_s3, [#allocation3]   ;;  %vm100_vm3 = vcmask 7168  }
 0x1f3   :  { %v96_v16 = vpop.xlane.xlu0 %95 }
 0x1f4   :  { %142 = vlog2.f32 %v96_v16 }
 0x201   :  { %v143_v17 = vpop.eup %142 }
 0x202   :  { %v98_v18 = vmul.f32 0.6931472, %v143_v17 }
 0x204   :  { %v99_v19 = vadd.f32 %v98_v18, %v90_v11 }
 0x206   :  { %101 = vst.msk [vmem:[%s216_s4] sm:$0xff] %vm100_vm3, %v99_v19 }
 0x207   :  { %164 = dma.done.wait [#allocation3], 128  }
 0x208   :  { %165 = vsyncadd [#allocation3], 4294967168 }
 0x209   :  { %119 = vsyncpa [#allocation3], 1 }

</bundles_post_ra>
